<compile_context>
chip_gen: v7x
topology: tpu7x:2x2x1
jax: 0.10.0
libtpu: 0.0.40
codegen_flags: <defaults>
</compile_context>

<pallas_src>
import numpy as np

import jax
import jax.numpy as jnp
from jax import lax
from jax.experimental import pallas as pl
from jax.experimental.pallas import tpu as pltpu

KSIZE = 3
BN_EPS = 1e-5
LEAKY_SLOPE = 0.1
LANE = 128


def _round_up(v, m):
    return (v + m - 1) // m * m


def _mocknet_kernel(patches_ref, w_ref, params_ref, mask_ref, o_ref):
    # patches_ref: (Cin*9, L)  lane-dense im2col patches (VMEM)
    # w_ref:       (Cout, Cin*9) conv weights, column order (kh, kw, ic)
    # params_ref:  (Cout, 2)   [:,0]=BN gamma, [:,1]=BN beta
    # mask_ref:    (1, L)      1/(N*OH*OW) on valid conv columns, 0 elsewhere
    # o_ref:       (Cout, L)   lane-dense output slab, L % 128 == 0

    # ---- Conv2d: every output channel in one MXU matmul ----
    conv = jnp.dot(w_ref[...], patches_ref[...],
                   preferred_element_type=jnp.float32)          # (Cout, L)

    mask = mask_ref[...]                                        # (1, L), pre-scaled
    gamma = params_ref[:, 0:1]                                  # (Cout, 1)
    beta = params_ref[:, 1:2]                                   # (Cout, 1)

    # ---- BatchNorm2d (training: biased batch stats over valid columns) ----
    mean = jnp.sum(conv * mask, axis=-1, keepdims=True)         # (Cout, 1)
    d = conv - mean
    var = jnp.sum(d * d * mask, axis=-1, keepdims=True)         # (Cout, 1)
    scale = gamma * lax.rsqrt(var + BN_EPS)                     # EUP rsqrt
    shift = beta - mean * scale

    # ---- fused BN affine + LeakyReLU(0.1), single unmasked lane-dense store ----
    y = conv * scale + shift
    o_ref[...] = jnp.where(y >= 0, y, LEAKY_SLOPE * y)


def mocknet_forward(x, conv_w, conv_b, bn_gamma, bn_beta):
    """x: (N, Cin, H, W) f32  ->  (N, Cout, H-2, W-2) f32 (NCHW, like PyTorch).

    Note: conv_b is accepted for API parity with the PyTorch module but is not
    used by the kernel — training-mode BN cancels it exactly on the forward
    activation (it would only matter for the running_mean update, not emitted).
    """
    del conv_b
    N, Cin, H, W = x.shape
    Cout = conv_w.shape[0]
    OH, OW = H - (KSIZE - 1), W - (KSIZE - 1)

    # One output column per flat (n, h, w) position; pad to a lane multiple so
    # the in-kernel store is unmasked.
    L = _round_up(N * H * W, LANE)
    max_off = (KSIZE - 1) * W + (KSIZE - 1)
    in_len = _round_up(L + max_off, LANE)

    # Wrapper-side layout plumbing (plain XLA): NCHW -> (Cin, N*H*W), zero pad,
    # then implicit im2col as 9 shifted lane-dense slices -> (Cin*9, L) with
    # row order (kh, kw, ic) to match the weight-matrix column order.
    x_flat = jnp.transpose(x, (1, 0, 2, 3)).reshape(Cin, N * H * W)
    x_flat = jnp.pad(x_flat.astype(jnp.float32), ((0, 0), (0, in_len - N * H * W)))
    taps = []
    for kh in range(KSIZE):
        for kw in range(KSIZE):
            off = kh * W + kw
            taps.append(x_flat[:, off:off + L])                 # (Cin, L)
    patches = jnp.concatenate(taps, axis=0)                     # (Cin*9, L)

    # Weight matrix with column order (kh, kw, ic) to match the patch rows.
    w_mat = jnp.transpose(conv_w, (0, 2, 3, 1)).reshape(Cout, KSIZE * KSIZE * Cin)
    w_mat = w_mat.astype(jnp.float32)

    # BN params merged into one (Cout, 2) input: [:,0]=gamma, [:,1]=beta.
    params = jnp.stack(
        [bn_gamma.astype(jnp.float32), bn_beta.astype(jnp.float32)], axis=-1)

    # Static validity mask (window didn't wrap across a row / image / padding),
    # pre-scaled by 1/(N*OH*OW) so BN stats are plain masked sums. Pure numpy:
    # depends only on static shapes, computed once at trace time.
    q = np.arange(L)
    valid = (q < N * H * W) & ((q % (H * W)) < OH * W) & ((q % W) < OW)
    mask_np = np.where(valid, 1.0 / float(N * OH * OW), 0.0).astype(np.float32)
    mask = jnp.asarray(mask_np.reshape(1, L))

    out_flat = pl.pallas_call(
        _mocknet_kernel,
        out_shape=jax.ShapeDtypeStruct((Cout, L), jnp.float32),
        in_specs=[
            pl.BlockSpec(memory_space=pltpu.MemorySpace.VMEM),  # patches
            pl.BlockSpec(memory_space=pltpu.MemorySpace.VMEM),  # conv weight matrix
            pl.BlockSpec(memory_space=pltpu.MemorySpace.VMEM),  # BN gamma/beta
            pl.BlockSpec(memory_space=pltpu.MemorySpace.VMEM),  # validity mask
        ],
        out_specs=pl.BlockSpec(memory_space=pltpu.MemorySpace.VMEM),
    )(patches, w_mat, params, mask)

    # (Cout, L) slab -> NCHW. Column q = n*H*W + h*W + w; wrapped/padded junk
    # columns land at h >= OH or w >= OW and are sliced away here.
    out = out_flat[:, :N * H * W].reshape(Cout, N, H, W)[:, :, :OH, :OW]
    return jnp.transpose(out, (1, 0, 2, 3))


def _reference_forward(x, conv_w, conv_b, bn_gamma, bn_beta):
    conv = lax.conv_general_dilated(
        x, conv_w, window_strides=(1, 1), padding="VALID",
        dimension_numbers=("NCHW", "OIHW", "NCHW"),
        precision=lax.Precision.HIGHEST)
    conv = conv + conv_b[None, :, None, None]
    mean = jnp.mean(conv, axis=(0, 2, 3), keepdims=True)
    var = jnp.mean((conv - mean) ** 2, axis=(0, 2, 3), keepdims=True)
    y = (conv - mean) * lax.rsqrt(var + BN_EPS)
    y = y * bn_gamma[None, :, None, None] + bn_beta[None, :, None, None]
    return jnp.where(y >= 0, y, LEAKY_SLOPE * y)


if __name__ == "__main__":
    key = jax.random.PRNGKey(0)
    kx, kw, kb = jax.random.split(key, 3)

    N, Cin, Cout, H, W = 2, 3, 3, 16, 16

    # Deterministic PyTorch-style uniform fan-in init.
    fan_in = Cin * KSIZE * KSIZE
    bound = float(fan_in) ** -0.5
    conv_w = jax.random.uniform(kw, (Cout, Cin, KSIZE, KSIZE), jnp.float32,
                                minval=-bound, maxval=bound)
    conv_b = jax.random.uniform(kb, (Cout,), jnp.float32,
                                minval=-bound, maxval=bound)
    bn_gamma = jnp.ones((Cout,), jnp.float32)
    bn_beta = jnp.zeros((Cout,), jnp.float32)

    x = jax.random.normal(kx, (N, Cin, H, W), jnp.float32)

    out = jax.block_until_ready(mocknet_forward(x, conv_w, conv_b, bn_gamma, bn_beta))

    assert out.shape == (N, Cout, H - 2, W - 2)
    assert out.dtype == jnp.float32

    ref = jax.block_until_ready(
        _reference_forward(x, conv_w, conv_b, bn_gamma, bn_beta))
    max_err = float(jnp.max(jnp.abs(out - ref)))
    assert jnp.allclose(out, ref, rtol=2e-3, atol=2e-3), f"max abs err {max_err}"

    print("KERNEL_OK")
</pallas_src>

<mosaic_0001>
module attributes {stable_mosaic.version = 11 : i64} {
  func.func @_mocknet_kernel(%arg0: memref<27x512xf32, #tpu.memory_space<vmem>>, %arg1: memref<3x27xf32, #tpu.memory_space<vmem>>, %arg2: memref<3x2xf32, #tpu.memory_space<vmem>>, %arg3: memref<1x512xf32, #tpu.memory_space<vmem>>, %arg4: memref<3x512xf32, #tpu.memory_space<vmem>>) attributes {dimension_semantics = [], scalar_prefetch = 0 : i64, scratch_operands = 0 : i64, tpu.core_type = #tpu.core_type<tc>} {
    %c0 = arith.constant 0 : index
    %c0_0 = arith.constant 0 : index
    %0 = vector.load %arg1[%c0, %c0_0] : memref<3x27xf32, #tpu.memory_space<vmem>>, vector<3x27xf32>
    %c0_1 = arith.constant 0 : index
    %c0_2 = arith.constant 0 : index
    %1 = vector.load %arg0[%c0_1, %c0_2] : memref<27x512xf32, #tpu.memory_space<vmem>>, vector<27x512xf32>
    %cst = arith.constant dense<0.000000e+00> : vector<3x512xf32>
    %2 = tpu.matmul %0, %1, %cst {dimension_numbers = #tpu.dot_dimension_numbers<[1], [0], [0], [1], [0, 0, 1, 1], [], []>} : vector<3x27xf32>, vector<27x512xf32>, vector<3x512xf32> -> vector<3x512xf32>
    %c0_3 = arith.constant 0 : index
    %c0_4 = arith.constant 0 : index
    %3 = vector.load %arg3[%c0_3, %c0_4] : memref<1x512xf32, #tpu.memory_space<vmem>>, vector<1x512xf32>
    %c0_5 = arith.constant 0 : index
    %c0_6 = arith.constant 0 : index
    %4 = vector.load %arg2[%c0_5, %c0_6] : memref<3x2xf32, #tpu.memory_space<vmem>>, vector<3x1xf32>
    %c0_7 = arith.constant 0 : index
    %c1 = arith.constant 1 : index
    %5 = vector.load %arg2[%c0_7, %c1] : memref<3x2xf32, #tpu.memory_space<vmem>>, vector<3x1xf32>
    %6 = vector.broadcast %3 : vector<1x512xf32> to vector<3x512xf32>
    %7 = arith.mulf %2, %6 : vector<3x512xf32>
    %cst_8 = arith.constant dense<0.000000e+00> : vector<3xf32>
    %8 = vector.multi_reduction <add>, %7, %cst_8 [1] : vector<3x512xf32> to vector<3xf32>
    %9 = vector.shape_cast %8 : vector<3xf32> to vector<3x1xf32>
    %10 = vector.broadcast %9 : vector<3x1xf32> to vector<3x512xf32>
    %11 = arith.subf %2, %10 : vector<3x512xf32>
    %12 = arith.mulf %11, %11 : vector<3x512xf32>
    %13 = vector.broadcast %3 : vector<1x512xf32> to vector<3x512xf32>
    %14 = arith.mulf %12, %13 : vector<3x512xf32>
    %cst_9 = arith.constant dense<0.000000e+00> : vector<3xf32>
    %15 = vector.multi_reduction <add>, %14, %cst_9 [1] : vector<3x512xf32> to vector<3xf32>
    %16 = vector.shape_cast %15 : vector<3xf32> to vector<3x1xf32>
    %cst_10 = arith.constant 9.99999974E-6 : f32
    %17 = vector.broadcast %cst_10 : f32 to vector<3x1xf32>
    %18 = arith.addf %16, %17 : vector<3x1xf32>
    %19 = math.rsqrt %18 : vector<3x1xf32>
    %20 = arith.mulf %4, %19 : vector<3x1xf32>
    %21 = arith.mulf %9, %20 : vector<3x1xf32>
    %22 = arith.subf %5, %21 : vector<3x1xf32>
    %23 = vector.broadcast %20 : vector<3x1xf32> to vector<3x512xf32>
    %24 = arith.mulf %2, %23 : vector<3x512xf32>
    %25 = vector.broadcast %22 : vector<3x1xf32> to vector<3x512xf32>
    %26 = arith.addf %24, %25 : vector<3x512xf32>
    %cst_11 = arith.constant 0.000000e+00 : f32
    %27 = vector.broadcast %cst_11 : f32 to vector<3x512xf32>
    %28 = arith.cmpf oge, %26, %27 : vector<3x512xf32>
    %cst_12 = arith.constant 1.000000e-01 : f32
    %29 = vector.broadcast %cst_12 : f32 to vector<3x512xf32>
    %30 = arith.mulf %29, %26 : vector<3x512xf32>
    %31 = arith.select %28, %26, %30 : vector<3x512xi1>, vector<3x512xf32>
    %c0_13 = arith.constant 0 : index
    %c0_14 = arith.constant 0 : index
    %32 = vector.load %arg4[%c0_13, %c0_14] : memref<3x512xf32, #tpu.memory_space<vmem>>, vector<3x512xf32>
    tpu.vector_store %arg4[%c0_13, %c0_14], %31 {strides = array<i32>} : memref<3x512xf32, #tpu.memory_space<vmem>>, vector<3x512xf32>,
    return
  }
}

</mosaic_0001>

<bundles_post_ra>
// kernel: tpu_custom_call.1
= control target key start
LH: loop header
LB: loop body
LE: loop exit
PB: predicated region body
PF: predicated region fallthrough
CT: control target
= control target key end

     0   :  { %9 = vsyncpa [#allocation3], 0  ;;  %s504_s0 = inlined_call_operand.hbm [shape: f32[27,512], index: 0, kind: input, shape index: {}]   ;;  %s505_s1 = inlined_call_operand.vmem [shape: f32[3,27], index: 1, kind: input, shape index: {}]   ;;  %s506_s2 = inlined_call_operand.vmem [shape: f32[3,2], index: 2, kind: input, shape index: {}]   ;;  %s507_s3 = inlined_call_operand.vmem [shape: f32[1,512], index: 3, kind: input, shape index: {}]   ;;  %s508_s4 = inlined_call_operand.hbm [shape: f32[3,512], index: 4, kind: output, shape index: {}]  }
   0x1   :  { %10 = vsyncpa [#allocation4], 0  ;;  %s416_s15 = smov [#allocation2]   ;;  %s368_s19 = scalar_lea.hbm %s504_s0, 2048 }
   0x2   :  { %s16_s16 = sshll.u32 %s416_s15, 4  ;;  %p369_p0 = scmp.ne.s32.totalorder %s504_s0, %s368_s19  ;;  %s17_s16 = int_to_ptr.vmem [resolvable:$true] %s16_s16 }
   0x3   :  { %p372_p1 = scmp.lt.u32.totalorder %s368_s19, %s504_s0 }
   0x5   :  { %p374_p2 = pnand %p372_p1, %p369_p0 }
   0x7   :  { %377 = shalt.err (!%p374_p2)
}
   0x8   :  { %s378_s24 = scalar_lea.vmem %s17_s16, 2048  ;;  %p383_p4 = scmp.lt.s32.totalorder %s17_s16, %s17_s16 }
   0x9   :  { %p379_p3 = scmp.ne.s32.totalorder %s17_s16, %s378_s24  ;;  %p384_p5 = scmp.lt.s32.totalorder %s378_s24, %s378_s24 }
   0xb   :  { %p385_p6 = por %p384_p5, %p383_p4 }
   0xd   :  { %p386_p7 = pnand %p385_p6, %p379_p3 }
   0xf   :  { %389 = shalt.err (!%p386_p7)
}
  0x10   :  { %s417_s25 = smov 512   ;;  %s418_s26 = smov 32  }
  0x11   :  { %22 = dma.hbm_to_vmem [thread:$0]  %s504_s0, 2048, %s17_s16, [#allocation3], %s417_s25, %s417_s25, %s418_s26  }
  0x12   :  { %412 = dma.done.wait [#allocation3], 2048  }
  0x13   :  { %413 = vsyncadd [#allocation3], 4294965248  ;;  %v419_v0 = vmov 0.0   ;;  %vm53_vm0 = vcmask 1042432   ;;  %vm420_vm1 = vmmov 1   ;;  %v34_v2 = vld [vmem:[#allocation2 + $0x8] sm:$0xff]  ;;  %v211_v27 = vlaneseq }
  0x14   :  { %130 = vmatprep.mubr.f32.mxu0 %v419_v0  ;;  %201 = vmatprep.mubr.f32.mxu1 %v419_v0  ;;  %vm463_vm2 = vmpackc.low %vm53_vm0, %vm420_vm1  ;;  %v38_v3 = vld [vmem:[#allocation2 + $0x28] sm:$0xff]  ;;  %v33_v4 = vld [vmem:[#allocation2] sm:$0xff]  ;;  %vm49_vm3 = vcmask 220160   ;;  %s423_s6 = smov 1  }
  0x15   :  { %v335_v5 = vpack.c.bf16 %v38_v3, %v34_v2  ;;  %v37_v6 = vld [vmem:[#allocation2 + $0x20] sm:$0xff]  ;;  %v36_v7 = vld [vmem:[#allocation2 + $0x18] sm:$0xff]  ;;  %v35_v11 = vld [vmem:[#allocation2 + $0x10] sm:$0xff]  ;;  %v212_v28 = vshrl.u32 %v211_v27, 7 }
  0x16   :  { %v40_v8 = vld [vmem:[#allocation2 + $0x38] sm:$0xff]  ;;  %v337_v9 = vpack.c.bf16 %v37_v6, %v33_v4  ;;  %v39_v12 = vld [vmem:[#allocation2 + $0x30] sm:$0xff]  ;;  %v42_v13 = vld [vmem:[#allocation2 + $0x48] sm:$0xff] }
  0x17   :  { %v345_v10 = vpack.c.bf16 %v40_v8, %v36_v7  ;;  %336 = vmatprep.subr.bf16.mxu0 %v335_v5  ;;  %v347_v14 = vpack.c.bf16 %v39_v12, %v35_v11  ;;  %v46_v15 = vld [vmem:[#allocation2 + $0x68] sm:$0x7]  ;;  %v41_v16 = vld [vmem:[#allocation2 + $0x40] sm:$0xff]  ;;  %v44_v20 = vld [vmem:[#allocation2 + $0x58] sm:$0xff]  ;;  %v213_v29 = vsub.s32 0, %v212_v28  ;;  %v217_v31 = vsub.s32 1, %v212_v28 }
  0x18   :  { %v45_v17 = vld [vmem:[#allocation2 + $0x60] sm:$0x7]  ;;  %338 = vmatpush1.bf16.msra.mxu0 %v337_v9  ;;  %v339_v18 = vpack.c.bf16 %v46_v15, %v42_v13  ;;  %v48_v21 = vld [vmem:[#allocation2 + $0x78] sm:$0x7]  ;;  %v43_v22 = vld [vmem:[#allocation2 + $0x50] sm:$0xff]  ;;  %v221_v32 = vsub.s32 2, %v212_v28 }
  0x19   :  { %346 = vmatprep.subr.bf16.mxu1 %v345_v10  ;;  %v342_v19 = vpack.c.bf16 %v45_v17, %v41_v16  ;;  %v349_v23 = vpack.c.bf16 %v48_v21, %v44_v20  ;;  %v47_v24 = vld [vmem:[#allocation2 + $0x70] sm:$0x7]  ;;  %v32_v26 = vld [vmem:[%s505_s1] sm:$0x7]  ;;  %v225_v33 = vsub.s32 3, %v212_v28  ;;  %v421_v9 = vmov 0  }
  0x1a   :  { %348 = vmatpush1.bf16.msra.mxu1 %v347_v14  ;;  %341 = vmatprep.subr.msk.bf16.mxu0 %vm463_vm2, %v339_v18  ;;  %v352_v25 = vpack.c.bf16 %v47_v24, %v43_v22  ;;  %v208_v30 = vld [vmem:[%s507_s3] sm:$0xf]  ;;  %v422_v12 = vmov 1  }
  0x1b   :  { %351 = vmatprep.subr.msk.bf16.mxu1 %vm463_vm2, %v349_v23  ;;  %v214_v34 = vrot.slane %v208_v30, %v213_v29  ;;  %v218_v35 = vrot.slane %v208_v30, %v217_v31  ;;  %v222_v36 = vrot.slane %v208_v30, %v221_v32  ;;  %v226_v38 = vrot.slane %v208_v30, %v225_v33  ;;  %v209_v13 = vld [vmem:[%s506_s2] sm:$0x7]  ;;  %s424_s2 = smov [#allocation5]  }
  0x1c   :  { %344 = vmatpush1.bf16.msk.msra.mxu0 %vm463_vm2, %v342_v19  ;;  %364 = vset.pattern.permute.xlu1 %v421_v9  ;;  %s320_s7 = sshll.u32 %s424_s2, 4  ;;  %s321_s7 = int_to_ptr.vmem [resolvable:$true] %s320_s7 }
  0x1d   :  { %365 = vset.pattern.permute.xlu0 %v422_v12  ;;  %s390_s8 = scalar_lea.vmem %s321_s7, 256  ;;  %p395_p9 = scmp.lt.s32.totalorder %s321_s7, %s321_s7 }
  0x1e   :  { %354 = vmatpush1.bf16.msk.msra.mxu1 %vm463_vm2, %v352_v25  ;;  %p391_p8 = scmp.ne.s32.totalorder %s321_s7, %s390_s8  ;;  %p396_p10 = scmp.lt.s32.totalorder %s390_s8, %s390_s8 }
  0x1f   :  { %331 = vmatmul.mubr.msk.f32.vlgmr.msra.gmra.mrb[0].mxu0 %vm49_vm3, %v32_v26 }
  0x20   :  { %p397_p11 = por %p396_p10, %p395_p9 }
  0x21   :  { %334 = vmatmul.mubr.msk.f32.vlgmr.msra.gmra.mrb[0].mxu1 %vm49_vm3, %v32_v26 }
  0x22   :  { %p398_p12 = pnand %p397_p11, %p391_p8 }
  0xf2   :  { %v132_v37 = vpop.f32.mrb[0].mxu0 }
  0xf3   :  { %v231_v39 = vmul.f32 %v214_v34, %v132_v37  ;;  %v134_v40 = vpop.f32.mrb[1].mxu0 }
  0xf4   :  { %v203_v41 = vpop.f32.mrb[0].mxu1  ;;  %v232_v42 = vmul.f32 %v218_v35, %v134_v40 }
  0xf5   :  { %v233_v43 = vmul.f32 %v222_v36, %v203_v41  ;;  %v205_v44 = vpop.f32.mrb[1].mxu1  ;;  %v235_v45 = vsel %vm53_vm0, %v231_v39, 0.0 }
  0xf6   :  { %v236_v46 = vsel %vm53_vm0, %v232_v42, 0.0  ;;  %v234_v47 = vmul.f32 %v226_v38, %v205_v44 }
  0xf7   :  { %v238_v48 = vsel %vm53_vm0, %v233_v43, 0.0  ;;  %v237_v49 = vadd.f32 %v236_v46, %v235_v45 }
  0xf8   :  { %v240_v51 = vsel %vm53_vm0, %v234_v47, 0.0 }
  0xf9   :  { %v239_v50 = vadd.f32 %v238_v48, %v237_v49 }
  0xfb   :  { %v241_v52 = vadd.f32 %v240_v51, %v239_v50 }
  0xfd   :  { %242 = vadd.xlane.f32.xlu0 %v241_v52 }
 0x18a   :  { %v243_v53 = vpop.xlane.xlu0 %242 }
 0x18b   :  { %v244_v54 = vsub.f32 %v132_v37, %v243_v53  ;;  %v245_v55 = vsub.f32 %v134_v40, %v243_v53  ;;  %v246_v56 = vsub.f32 %v203_v41, %v243_v53  ;;  %v247_v57 = vsub.f32 %v205_v44, %v243_v53 }
 0x18d   :  { %v248_v58 = vmul.f32 %v244_v54, %v244_v54  ;;  %v249_v59 = vmul.f32 %v245_v55, %v245_v55  ;;  %v250_v60 = vmul.f32 %v246_v56, %v246_v56  ;;  %v251_v61 = vmul.f32 %v247_v57, %v247_v57 }
 0x18f   :  { %v252_v62 = vmul.f32 %v248_v58, %v214_v34  ;;  %v253_v63 = vmul.f32 %v249_v59, %v218_v35  ;;  %v254_v0 = vmul.f32 %v250_v60, %v222_v36  ;;  %v255_v1 = vmul.f32 %v251_v61, %v226_v38 }
 0x191   :  { %v256_v2 = vsel %vm53_vm0, %v252_v62, 0.0  ;;  %v257_v3 = vsel %vm53_vm0, %v253_v63, 0.0  ;;  %v259_v5 = vsel %vm53_vm0, %v254_v0, 0.0  ;;  %v261_v7 = vsel %vm53_vm0, %v255_v1, 0.0 }
 0x192   :  { %v258_v4 = vadd.f32 %v257_v3, %v256_v2 }
 0x194   :  { %v260_v6 = vadd.f32 %v259_v5, %v258_v4 }
 0x196   :  { %v262_v8 = vadd.f32 %v261_v7, %v260_v6 }
 0x198   :  { %263 = vadd.xlane.f32.xlu0 %v262_v8 }
 0x225   :  { %v264_v10 = vpop.xlane.xlu0 %263 }
 0x226   :  { %v265_v11 = vadd.f32 1e-05, %v264_v10 }
 0x228   :  { %366 = vrsqrt.f32 %v265_v11 }
 0x232   :  { %v367_v14 = vpop.eup %366 }
 0x233   :  { %v267_v15 = vmul.f32 %v367_v14, %v209_v13 }
 0x235   :  { %v268_v16 = vmul.f32 %v267_v15, %v243_v53 }
 0x237   :  { %270 = vrot.lane.b32.xlu1 %v268_v16, %s423_s6 }
 0x23b   :  { %276 = vperm.xlu1 %364, %v267_v15  }
 0x2a9   :  { %v271_v17 = vpop.permute.xlu1 %270 }
 0x2aa   :  { %v273_v18 = vsub.f32 %v209_v13, %v271_v17 }
 0x2ac   :  { %285 = vperm.xlu0 %365, %v273_v18  }
 0x2ba   :  { %v277_v19 = vpop.permute.xlu1 %276 }
 0x2bb   :  { %v279_v20 = vmul.f32 %v277_v19, %v132_v37  ;;  %v280_v21 = vmul.f32 %v277_v19, %v134_v40  ;;  %v281_v22 = vmul.f32 %v277_v19, %v203_v41  ;;  %v282_v23 = vmul.f32 %v277_v19, %v205_v44 }
 0x32b   :  { %v286_v24 = vpop.permute.xlu0 %285 }
 0x32c   :  { %v288_v25 = vadd.f32 %v286_v24, %v279_v20  ;;  %v289_v26 = vadd.f32 %v286_v24, %v280_v21  ;;  %v290_v27 = vadd.f32 %v286_v24, %v281_v22  ;;  %v291_v28 = vadd.f32 %v286_v24, %v282_v23 }
 0x32e   :  { %vm292_vm4 = vcmp.ge.f32.partialorder %v288_v25, 0.0  ;;  %vm293_vm5 = vcmp.ge.f32.partialorder %v289_v26, 0.0  ;;  %vm294_vm6 = vcmp.ge.f32.partialorder %v290_v27, 0.0  ;;  %vm295_vm7 = vcmp.ge.f32.partialorder %v291_v28, 0.0 }
 0x32f   :  { %v296_v29 = vmul.f32 0.1, %v288_v25  ;;  %v297_v30 = vmul.f32 0.1, %v289_v26  ;;  %v298_v31 = vmul.f32 0.1, %v290_v27 }
 0x330   :  { %v299_v32 = vmul.f32 0.1, %v291_v28 }
 0x331   :  { %v300_v33 = vsel %vm292_vm4, %v288_v25, %v296_v29  ;;  %v301_v34 = vsel %vm293_vm5, %v289_v26, %v297_v30  ;;  %v302_v35 = vsel %vm294_vm6, %v290_v27, %v298_v31 }
 0x332   :  { %v303_v36 = vsel %vm295_vm7, %v291_v28, %v299_v32  ;;  %v308_v37 = vcombine.low %v300_v33, %v301_v34 }
 0x333   :  { %v309_v38 = vcombine.low %v302_v35, %v303_v36 }
 0x334   :  { %312 = vst [vmem:[#allocation5] sm:$0x77] %v308_v37 }
 0x335   :  { %313 = vst [vmem:[#allocation5 + $0x8] sm:$0x77] %v309_v38 }
 0x336   :  { %401 = shalt.err (!%p398_p12)
}
 0x337   :  { %s402_s11 = scalar_lea.hbm %s508_s4, 256 }
 0x338   :  { %p403_p13 = scmp.ne.s32.totalorder %s508_s4, %s402_s11  ;;  %p406_p0 = scmp.lt.u32.totalorder %s402_s11, %s508_s4 }
 0x33a   :  { %p408_p1 = pnand %p406_p0, %p403_p13 }
 0x33c   :  { %411 = shalt.err (!%p408_p1)
}
 0x33d   :  { %323 = dma.vmem_to_hbm [thread:$0]  %s321_s7, 256, %s508_s4, [#allocation4]  }
 0x33e   :  { %414 = dma.done.wait [#allocation4], 256  }
 0x33f   :  { %415 = vsyncadd [#allocation4], 4294967040 }
 0x340   :  { %327 = vsyncpa [#allocation3], 1 }
 0x341   :  { %328 = vsyncpa [#allocation4], 1 }

</bundles_post_ra>
